<compile_context>
chip_gen: v6e
topology: v6e:2x2x1
jax: 0.10.0
libtpu: 0.0.40
codegen_flags: <defaults>
</compile_context>

<pallas_src>
import math

import jax
import jax.numpy as jnp
from jax.experimental import pallas as pl
from jax.experimental.pallas import tpu as pltpu

LATENT_DIM = 32
HIDDEN_DIM = 400
HIDDEN_PAD = 512           # 4 x 128: lane/K-aligned hidden width (zero-padded)
DATA_SIZE = (1, 28, 28)
DATA_DIM = 1 * 28 * 28     # 784 (kept as-is: last block dim == full array dim)
ETA = 1e-6                 # Constants.eta in the MMVAE reference implementation
_TB_MAX = 512              # max batch-tile rows per grid step


def _round_up(x, m):
    return ((x + m - 1) // m) * m


def _dec_kernel(z_ref, w1_ref, b1_ref, w2_ref, b2_ref, out_ref):
    # Two bf16 MXU matmuls (f32 accumulate) + f32 VPU/EUP epilogue on one batch tile.
    z = z_ref[...]                                                       # (TB, 32) bf16
    h = jnp.dot(z, w1_ref[...], preferred_element_type=jnp.float32)     # (TB, 512) f32
    h = jnp.maximum(h + b1_ref[...], 0.0)                               # ReLU; padded lanes stay 0
    p = jnp.dot(h.astype(jnp.bfloat16), w2_ref[...],
                preferred_element_type=jnp.float32)                     # (TB, 784) f32
    p = p + b2_ref[...]
    # sigmoid(p) == 0.5*tanh(0.5*p)+0.5  -> one EUP op per element (vs exp+recip)
    d = 0.5 * jnp.tanh(0.5 * p) + 0.5
    out_ref[...] = jnp.clip(d, ETA, 1.0 - ETA).astype(out_ref.dtype)


def pad_params(w1, b1, w2, b2):
    """One-time prep: zero-pad hidden dim 400->512 and cast weights to bf16.

    w1: (latent_dim, 400), b1: (400,), w2: (400, 784), b2: (784,)  [(in, out) layout].
    Zero padding keeps the math exact (padded K-lanes contribute 0).
    """
    w1p = jnp.zeros((LATENT_DIM, HIDDEN_PAD), jnp.bfloat16)
    w1p = w1p.at[:, :HIDDEN_DIM].set(w1.astype(jnp.bfloat16))
    b1p = jnp.zeros((1, HIDDEN_PAD), jnp.float32).at[:, :HIDDEN_DIM].set(b1)
    w2p = jnp.zeros((HIDDEN_PAD, DATA_DIM), jnp.bfloat16)
    w2p = w2p.at[:HIDDEN_DIM, :].set(w2.astype(jnp.bfloat16))
    b2p = b2.reshape(1, DATA_DIM).astype(jnp.float32)
    return w1p, b1p, w2p, b2p


def dec_forward(z, params):
    """z: (..., latent_dim) float. params: output of pad_params(). Returns (d, 0.75)."""
    w1p, b1p, w2p, b2p = params
    batch_dims = z.shape[:-1]
    B = int(math.prod(batch_dims)) if batch_dims else 1
    z2d = z.reshape(B, LATENT_DIM).astype(jnp.bfloat16)

    # Batch tile: ~ceil(B/2) rows (>= 2 grid steps when B > 8 -> megacore shards on v7x),
    # capped at _TB_MAX so large batches keep long DMAs with bounded VMEM.
    TB = min(_TB_MAX, _round_up(max((B + 1) // 2, 1), 8))
    B_pad = _round_up(B, TB)
    if B_pad != B:
        z2d = jnp.pad(z2d, ((0, B_pad - B), (0, 0)))

    cost = pl.CostEstimate(
        flops=2 * B_pad * (LATENT_DIM * HIDDEN_PAD + HIDDEN_PAD * DATA_DIM),
        transcendentals=B_pad * DATA_DIM,  # one tanh per output element
        bytes_accessed=(2 * B_pad * LATENT_DIM                               # z (bf16)
                        + 2 * (LATENT_DIM * HIDDEN_PAD + HIDDEN_PAD * DATA_DIM)  # weights (bf16)
                        + 4 * (HIDDEN_PAD + DATA_DIM)                        # biases (f32)
                        + 4 * B_pad * DATA_DIM),                             # output (f32)
    )

    out = pl.pallas_call(
        _dec_kernel,
        out_shape=jax.ShapeDtypeStruct((B_pad, DATA_DIM), jnp.float32),
        grid=(B_pad // TB,),
        in_specs=[
            pl.BlockSpec((TB, LATENT_DIM), lambda i: (i, 0)),          # z tile per step
            pl.BlockSpec((LATENT_DIM, HIDDEN_PAD), lambda i: (0, 0)),  # weights resident
            pl.BlockSpec((1, HIDDEN_PAD), lambda i: (0, 0)),
            pl.BlockSpec((HIDDEN_PAD, DATA_DIM), lambda i: (0, 0)),
            pl.BlockSpec((1, DATA_DIM), lambda i: (0, 0)),
        ],
        out_specs=pl.BlockSpec((TB, DATA_DIM), lambda i: (i, 0)),
        compiler_params=pltpu.CompilerParams(
            dimension_semantics=("parallel",),   # batch tiles shard over v7x megacore
        ),
        cost_estimate=cost,
    )(z2d, w1p, b1p, w2p, b2p)

    if B_pad != B:
        out = out[:B]
    d = out.reshape(*batch_dims, *DATA_SIZE)
    return d, jnp.float32(0.75)


def init_params(key, latent_dim=LATENT_DIM):
    """Deterministic init matching PyTorch nn.Linear default:
    U(-1/sqrt(fan_in), 1/sqrt(fan_in)) for weight and bias; weights stored (in, out)."""
    k1, k2, k3, k4 = jax.random.split(key, 4)
    bnd1 = 1.0 / math.sqrt(latent_dim)
    bnd2 = 1.0 / math.sqrt(HIDDEN_DIM)
    w1 = jax.random.uniform(k1, (latent_dim, HIDDEN_DIM), jnp.float32, -bnd1, bnd1)
    b1 = jax.random.uniform(k2, (HIDDEN_DIM,), jnp.float32, -bnd1, bnd1)
    w2 = jax.random.uniform(k3, (HIDDEN_DIM, DATA_DIM), jnp.float32, -bnd2, bnd2)
    b2 = jax.random.uniform(k4, (DATA_DIM,), jnp.float32, -bnd2, bnd2)
    return w1, b1, w2, b2


if __name__ == "__main__":
    key = jax.random.PRNGKey(0)
    kp, kz = jax.random.split(key)
    w1, b1, w2, b2 = init_params(kp)
    params = pad_params(w1, b1, w2, b2)   # one-time padding/bf16 cast (hoisted)

    # z: (batch=2, samples=4, latent_dim=32) -> d: (2, 4, 1, 28, 28)
    z = jax.random.normal(kz, (2, 4, LATENT_DIM), jnp.float32)

    d, scale = dec_forward(z, params)
    d = jax.block_until_ready(d)

    assert d.shape == (2, 4, 1, 28, 28), d.shape
    assert float(d.min()) >= ETA and float(d.max()) <= 1.0 - ETA
    assert float(scale) == 0.75

    # sanity-check against a plain f32 JAX reference of the same math;
    # bf16 matmuls -> tolerance loosened accordingly
    ref = jax.nn.sigmoid(
        jnp.maximum(z.reshape(8, LATENT_DIM) @ w1 + b1, 0.0) @ w2 + b2
    )
    ref = jnp.clip(ref, ETA, 1.0 - ETA).reshape(2, 4, 1, 28, 28)
    assert jnp.allclose(d, ref, atol=2e-2, rtol=2e-2), "mismatch vs reference"

    print("KERNEL_OK")
</pallas_src>

<mosaic_0001>
module attributes {stable_mosaic.version = 11 : i64} {
  func.func @_dec_kernel(%arg0: i32, %arg1: memref<8x32xbf16, #tpu.memory_space<vmem>>, %arg2: memref<32x512xbf16, #tpu.memory_space<vmem>>, %arg3: memref<1x512xf32, #tpu.memory_space<vmem>>, %arg4: memref<512x784xbf16, #tpu.memory_space<vmem>>, %arg5: memref<1x784xf32, #tpu.memory_space<vmem>>, %arg6: memref<8x784xf32, #tpu.memory_space<vmem>>) attributes {dimension_semantics = [#tpu.dimension_semantics<parallel>], iteration_bounds = array<i64: 1>, scalar_prefetch = 0 : i64, scratch_operands = 0 : i64, tpu.core_type = #tpu.core_type<tc>, window_params = [{transform_indices = @transform_0, window_bounds = array<i64: 8, 32>}, {pipeline_mode = #tpu.pipeline_mode<synchronous>, transform_indices = @transform_1, window_bounds = array<i64: 32, 512>}, {pipeline_mode = #tpu.pipeline_mode<synchronous>, transform_indices = @transform_2, window_bounds = array<i64: 1, 512>}, {pipeline_mode = #tpu.pipeline_mode<synchronous>, transform_indices = @transform_3, window_bounds = array<i64: 512, 784>}, {pipeline_mode = #tpu.pipeline_mode<synchronous>, transform_indices = @transform_4, window_bounds = array<i64: 1, 784>}, {transform_indices = @transform_5, window_bounds = array<i64: 8, 784>}]} {
    %c0 = arith.constant 0 : index
    %c0_0 = arith.constant 0 : index
    %0 = vector.load %arg1[%c0, %c0_0] : memref<8x32xbf16, #tpu.memory_space<vmem>>, vector<8x32xbf16>
    %c0_1 = arith.constant 0 : index
    %c0_2 = arith.constant 0 : index
    %1 = vector.load %arg2[%c0_1, %c0_2] : memref<32x512xbf16, #tpu.memory_space<vmem>>, vector<32x512xbf16>
    %cst = arith.constant dense<0.000000e+00> : vector<8x512xf32>
    %2 = tpu.matmul %0, %1, %cst {dimension_numbers = #tpu.dot_dimension_numbers<[1], [0], [0], [1], [0, 0, 1, 1], [], []>} : vector<8x32xbf16>, vector<32x512xbf16>, vector<8x512xf32> -> vector<8x512xf32>
    %c0_3 = arith.constant 0 : index
    %c0_4 = arith.constant 0 : index
    %3 = vector.load %arg3[%c0_3, %c0_4] : memref<1x512xf32, #tpu.memory_space<vmem>>, vector<1x512xf32>
    %4 = vector.broadcast %3 : vector<1x512xf32> to vector<8x512xf32>
    %5 = arith.addf %2, %4 : vector<8x512xf32>
    %cst_5 = arith.constant 0.000000e+00 : f32
    %6 = vector.broadcast %cst_5 : f32 to vector<8x512xf32>
    %7 = arith.maximumf %5, %6 : vector<8x512xf32>
    %8 = arith.truncf %7 : vector<8x512xf32> to vector<8x512xbf16>
    %c0_6 = arith.constant 0 : index
    %c0_7 = arith.constant 0 : index
    %9 = vector.load %arg4[%c0_6, %c0_7] : memref<512x784xbf16, #tpu.memory_space<vmem>>, vector<512x784xbf16>
    %cst_8 = arith.constant dense<0.000000e+00> : vector<8x784xf32>
    %10 = tpu.matmul %8, %9, %cst_8 {dimension_numbers = #tpu.dot_dimension_numbers<[1], [0], [0], [1], [0, 0, 1, 1], [], []>} : vector<8x512xbf16>, vector<512x784xbf16>, vector<8x784xf32> -> vector<8x784xf32>
    %c0_9 = arith.constant 0 : index
    %c0_10 = arith.constant 0 : index
    %11 = vector.load %arg5[%c0_9, %c0_10] : memref<1x784xf32, #tpu.memory_space<vmem>>, vector<1x784xf32>
    %12 = vector.broadcast %11 : vector<1x784xf32> to vector<8x784xf32>
    %13 = arith.addf %10, %12 : vector<8x784xf32>
    %cst_11 = arith.constant 5.000000e-01 : f32
    %14 = vector.broadcast %cst_11 : f32 to vector<8x784xf32>
    %15 = arith.mulf %14, %13 : vector<8x784xf32>
    %16 = math.tanh %15 : vector<8x784xf32>
    %cst_12 = arith.constant 5.000000e-01 : f32
    %17 = vector.broadcast %cst_12 : f32 to vector<8x784xf32>
    %18 = arith.mulf %17, %16 : vector<8x784xf32>
    %cst_13 = arith.constant 5.000000e-01 : f32
    %19 = vector.broadcast %cst_13 : f32 to vector<8x784xf32>
    %20 = arith.addf %18, %19 : vector<8x784xf32>
    %cst_14 = arith.constant 9.99999997E-7 : f32
    %cst_15 = arith.constant 0.999998986 : f32
    %21 = vector.broadcast %cst_14 : f32 to vector<8x784xf32>
    %22 = arith.maximumf %21, %20 : vector<8x784xf32>
    %23 = vector.broadcast %cst_15 : f32 to vector<8x784xf32>
    %24 = arith.minimumf %23, %22 : vector<8x784xf32>
    %c0_16 = arith.constant 0 : index
    %c0_17 = arith.constant 0 : index
    %25 = vector.load %arg6[%c0_16, %c0_17] : memref<8x784xf32, #tpu.memory_space<vmem>>, vector<8x784xf32>
    tpu.vector_store %arg6[%c0_16, %c0_17], %24 {strides = array<i32>} : memref<8x784xf32, #tpu.memory_space<vmem>>, vector<8x784xf32>,
    return
  }
  func.func @transform_0(%arg0: i32) -> (i32, i32) {
    %c0_i32 = arith.constant 0 : i32
    %c0_i32_0 = arith.constant 0 : i32
    return %arg0, %c0_i32 : i32, i32
  }
  func.func @transform_1(%arg0: i32) -> (i32, i32) {
    %c0_i32 = arith.constant 0 : i32
    %c0_i32_0 = arith.constant 0 : i32
    %c0_i32_1 = arith.constant 0 : i32
    return %c0_i32, %c0_i32_0 : i32, i32
  }
  func.func @transform_2(%arg0: i32) -> (i32, i32) {
    %c0_i32 = arith.constant 0 : i32
    %c0_i32_0 = arith.constant 0 : i32
    %c0_i32_1 = arith.constant 0 : i32
    return %c0_i32, %c0_i32_0 : i32, i32
  }
  func.func @transform_3(%arg0: i32) -> (i32, i32) {
    %c0_i32 = arith.constant 0 : i32
    %c0_i32_0 = arith.constant 0 : i32
    %c0_i32_1 = arith.constant 0 : i32
    return %c0_i32, %c0_i32_0 : i32, i32
  }
  func.func @transform_4(%arg0: i32) -> (i32, i32) {
    %c0_i32 = arith.constant 0 : i32
    %c0_i32_0 = arith.constant 0 : i32
    %c0_i32_1 = arith.constant 0 : i32
    return %c0_i32, %c0_i32_0 : i32, i32
  }
  func.func @transform_5(%arg0: i32) -> (i32, i32) {
    %c0_i32 = arith.constant 0 : i32
    %c0_i32_0 = arith.constant 0 : i32
    return %arg0, %c0_i32 : i32, i32
  }
}

</mosaic_0001>

<bundles_post_ra>
// kernel: tpu_custom_call.1
= control target key start
LH: loop header
LB: loop body
LE: loop exit
PB: predicated region body
PF: predicated region fallthrough
CT: control target
= control target key end

     0   :  { %v2670_v2 = vmov 0   ;;  %vm93_vm0 = vcmask 261120   ;;  %s3468_s0 = inlined_call_operand.vmem [shape: bf16[8,32], index: 0, kind: input, shape index: {}]   ;;  %s3469_s1 = inlined_call_operand.vmem [shape: bf16[32,512], index: 1, kind: input, shape index: {}]   ;;  %s3470_s2 = inlined_call_operand.vmem [shape: f32[1,512], index: 2, kind: input, shape index: {}]   ;;  %s3471_s3 = inlined_call_operand.vmem [shape: bf16[512,784], index: 3, kind: input, shape index: {}]   ;;  %s3472_s4 = inlined_call_operand.vmem [shape: f32[1,784], index: 4, kind: input, shape index: {}]   ;;  %s3473_s5 = inlined_call_operand.hbm [shape: f32[8,784], index: 5, kind: output, shape index: {}]  }
   0x1   :  { %v2302_v0 = vld [vmem:[%s3469_s1 + $0x24] ss:$16 sps:$4 sm:$0xff]   ;;  %v2304_v1 = vld [vmem:[%s3469_s1 + $0x2c] ss:$16 sps:$4 sm:$0xff]   ;;  %129 = vmatprep.mubr.bf16.mxu0 %v2670_v2  ;;  %170 = vmatprep.mubr.bf16.mxu1 %v2670_v2  ;;  %v2306_v3 = vld [vmem:[%s3469_s1 + $0x20] ss:$16 sps:$4 sm:$0xff]  }
   0x2   :  { %109 = vmatprep.subr.bf16.mxu0 %v2302_v0  ;;  %v2307_v4 = vld [vmem:[%s3469_s1 + $0x28] ss:$16 sps:$4 sm:$0xff]   ;;  %150 = vmatprep.subr.bf16.mxu1 %v2304_v1  ;;  %v2308_v5 = vld [vmem:[%s3469_s1 + $0x4] ss:$16 sps:$4 sm:$0xff]   ;;  %v2310_v6 = vld [vmem:[%s3469_s1 + $0xc] ss:$16 sps:$4 sm:$0xff]  }
   0x3   :  { %110 = vmatpush1.bf16.msra.mxu0 %v2306_v3  ;;  %151 = vmatpush1.bf16.msra.mxu1 %v2307_v4  ;;  %v2312_v7 = vld [vmem:[%s3469_s1] ss:$16 sps:$4 sm:$0xff]   ;;  %v2313_v8 = vld [vmem:[%s3469_s1 + $0x8] ss:$16 sps:$4 sm:$0xff]  }
   0x4   :  { %111 = vmatprep.subr.bf16.mxu0 %v2308_v5  ;;  %152 = vmatprep.subr.bf16.mxu1 %v2310_v6  ;;  %v22_v9 = vld [vmem:[%s3468_s0] sm:$0xf]  ;;  %v2314_v10 = vld [vmem:[%s3471_s3 + $0x188] ss:$28 sps:$4 sm:$0xff]   ;;  %v2322_v14 = vld [vmem:[%s3471_s3 + $0x154] ss:$28 sps:$4 sm:$0xff]  }
   0x5   :  { %v2316_v11 = vld [vmem:[%s3471_s3 + $0x18c] ss:$28 sps:$4 sm:$0xff]   ;;  %v2325_v15 = vld [vmem:[%s3471_s3 + $0x4d4] ss:$28 sps:$4 sm:$0xff]   ;;  %v2328_v18 = vld [vmem:[%s3471_s3 + $0x11c] ss:$28 sps:$4 sm:$0xff]  }
   0x6   :  { %v2317_v12 = vld [vmem:[%s3471_s3 + $0x508] ss:$28 sps:$4 sm:$0xff]   ;;  %v2320_v16 = vld [vmem:[%s3471_s3 + $0x150] ss:$28 sps:$4 sm:$0xff]   ;;  %v2331_v19 = vld [vmem:[%s3471_s3 + $0x49c] ss:$28 sps:$4 sm:$0xff]  }
   0x7   :  { %112 = vmatpush1.bf16.msra.mxu0 %v2312_v7  ;;  %153 = vmatpush1.bf16.msra.mxu1 %v2313_v8  ;;  %v2319_v13 = vld [vmem:[%s3471_s3 + $0x50c] ss:$28 sps:$4 sm:$0xff]   ;;  %v2326_v20 = vld [vmem:[%s3471_s3 + $0x118] ss:$28 sps:$4 sm:$0xff]   ;;  %v2334_v22 = vld [vmem:[%s3471_s3 + $0xe4] ss:$28 sps:$4 sm:$0xff]  }
   0x8   :  { %1632 = vmatprep.subr.bf16.mxu0 %v2316_v11  ;;  %1673 = vmatprep.subr.bf16.mxu1 %v2319_v13  ;;  %v2323_v17 = vld [vmem:[%s3471_s3 + $0x4d0] ss:$28 sps:$4 sm:$0xff]   ;;  %v2329_v21 = vld [vmem:[%s3471_s3 + $0x498] ss:$28 sps:$4 sm:$0xff]   ;;  %v2337_v23 = vld [vmem:[%s3471_s3 + $0x464] ss:$28 sps:$4 sm:$0xff]  }
   0x9   :  { %v2332_v24 = vld [vmem:[%s3471_s3 + $0xe0] ss:$28 sps:$4 sm:$0xff]   ;;  %v2340_v26 = vld [vmem:[%s3471_s3 + $0xac] ss:$28 sps:$4 sm:$0xff]   ;;  %v2346_v30 = vld [vmem:[%s3471_s3 + $0x74] ss:$28 sps:$4 sm:$0xff]  }
   0xa   :  { %2030 = vmatmul.mubr.msk.bf16.vlgmr.msra.gmra.mxu0 %vm93_vm0, %v22_v9  ;;  %2031 = vmatmul.mubr.msk.bf16.vlgmr.msra.gmra.mxu1 %vm93_vm0, %v22_v9  ;;  %v2335_v25 = vld [vmem:[%s3471_s3 + $0x460] ss:$28 sps:$4 sm:$0xff]   ;;  %v2343_v27 = vld [vmem:[%s3471_s3 + $0x42c] ss:$28 sps:$4 sm:$0xff]   ;;  %v2349_v31 = vld [vmem:[%s3471_s3 + $0x3f4] ss:$28 sps:$4 sm:$0xff]  }
   0xb   :  { %1633 = vmatpush1.bf16.msra.mxu0 %v2314_v10  ;;  %1674 = vmatpush1.bf16.msra.mxu1 %v2317_v12  ;;  %v2338_v28 = vld [vmem:[%s3471_s3 + $0xa8] ss:$28 sps:$4 sm:$0xff]   ;;  %v2344_v32 = vld [vmem:[%s3471_s3 + $0x70] ss:$28 sps:$4 sm:$0xff]   ;;  %v2352_v34 = vld [vmem:[%s3471_s3 + $0x3c] ss:$28 sps:$4 sm:$0xff]  }
   0xc   :  { %1634 = vmatprep.subr.bf16.mxu0 %v2322_v14  ;;  %1675 = vmatprep.subr.bf16.mxu1 %v2325_v15  ;;  %v2341_v29 = vld [vmem:[%s3471_s3 + $0x428] ss:$28 sps:$4 sm:$0xff]   ;;  %v2347_v33 = vld [vmem:[%s3471_s3 + $0x3f0] ss:$28 sps:$4 sm:$0xff]   ;;  %v2355_v35 = vld [vmem:[%s3471_s3 + $0x3bc] ss:$28 sps:$4 sm:$0xff]  }
   0xd   :  { %v2350_v36 = vld [vmem:[%s3471_s3 + $0x38] ss:$28 sps:$4 sm:$0xff]   ;;  %v2358_v38 = vld [vmem:[%s3471_s3 + $0x4] ss:$28 sps:$4 sm:$0xff]   ;;  %v2364_v42 = vld [vmem:[%s3471_s3 + $0x34c] ss:$28 sps:$4 sm:$0xff]  }
   0xe   :  { %v2353_v37 = vld [vmem:[%s3471_s3 + $0x3b8] ss:$28 sps:$4 sm:$0xff]   ;;  %v2361_v39 = vld [vmem:[%s3471_s3 + $0x384] ss:$28 sps:$4 sm:$0xff]   ;;  %v2367_v43 = vld [vmem:[%s3471_s3 + $0x6cc] ss:$28 sps:$4 sm:$0xff]  }
   0xf   :  { %1635 = vmatpush1.bf16.msra.mxu0 %v2320_v16  ;;  %1676 = vmatpush1.bf16.msra.mxu1 %v2323_v17  ;;  %v2356_v40 = vld [vmem:[%s3471_s3] ss:$28 sps:$4 sm:$0xff]   ;;  %v2362_v44 = vld [vmem:[%s3471_s3 + $0x348] ss:$28 sps:$4 sm:$0xff]   ;;  %v2370_v46 = vld [vmem:[%s3471_s3 + $0x314] ss:$28 sps:$4 sm:$0xff]  }
  0x10   :  { %1636 = vmatprep.subr.bf16.mxu0 %v2328_v18  ;;  %1677 = vmatprep.subr.bf16.mxu1 %v2331_v19  ;;  %v2359_v41 = vld [vmem:[%s3471_s3 + $0x380] ss:$28 sps:$4 sm:$0xff]   ;;  %v2365_v45 = vld [vmem:[%s3471_s3 + $0x6c8] ss:$28 sps:$4 sm:$0xff]   ;;  %v2373_v47 = vld [vmem:[%s3471_s3 + $0x694] ss:$28 sps:$4 sm:$0xff]  }
  0x11   :  { %v2368_v48 = vld [vmem:[%s3471_s3 + $0x310] ss:$28 sps:$4 sm:$0xff]   ;;  %v2376_v50 = vld [vmem:[%s3471_s3 + $0x2dc] ss:$28 sps:$4 sm:$0xff]   ;;  %v2382_v54 = vld [vmem:[%s3471_s3 + $0x2a4] ss:$28 sps:$4 sm:$0xff]  }
  0x12   :  { %v2371_v49 = vld [vmem:[%s3471_s3 + $0x690] ss:$28 sps:$4 sm:$0xff]   ;;  %v2379_v51 = vld [vmem:[%s3471_s3 + $0x65c] ss:$28 sps:$4 sm:$0xff]   ;;  %v2385_v55 = vld [vmem:[%s3471_s3 + $0x624] ss:$28 sps:$4 sm:$0xff]  }
  0x13   :  { %1637 = vmatpush1.bf16.msra.mxu0 %v2326_v20  ;;  %1678 = vmatpush1.bf16.msra.mxu1 %v2329_v21  ;;  %v2374_v52 = vld [vmem:[%s3471_s3 + $0x2d8] ss:$28 sps:$4 sm:$0xff]   ;;  %v2380_v56 = vld [vmem:[%s3471_s3 + $0x2a0] ss:$28 sps:$4 sm:$0xff]   ;;  %v2388_v58 = vld [vmem:[%s3471_s3 + $0x26c] ss:$28 sps:$4 sm:$0xff]  }
  0x14   :  { %1638 = vmatprep.subr.bf16.mxu0 %v2334_v22  ;;  %1679 = vmatprep.subr.bf16.mxu1 %v2337_v23  ;;  %v2377_v53 = vld [vmem:[%s3471_s3 + $0x658] ss:$28 sps:$4 sm:$0xff]   ;;  %v2383_v57 = vld [vmem:[%s3471_s3 + $0x620] ss:$28 sps:$4 sm:$0xff]   ;;  %v2391_v59 = vld [vmem:[%s3471_s3 + $0x5ec] ss:$28 sps:$4 sm:$0xff]  }
  0x15   :  { %v2386_v60 = vld [vmem:[%s3471_s3 + $0x268] ss:$28 sps:$4 sm:$0xff]   ;;  %v2394_v62 = vld [vmem:[%s3471_s3 + $0x234] ss:$28 sps:$4 sm:$0xff]   ;;  %v2400_v2 = vld [vmem:[%s3471_s3 + $0x1fc] ss:$28 sps:$4 sm:$0xff]  }
  0x16   :  { %v2389_v61 = vld [vmem:[%s3471_s3 + $0x5e8] ss:$28 sps:$4 sm:$0xff]   ;;  %v2397_v63 = vld [vmem:[%s3471_s3 + $0x5b4] ss:$28 sps:$4 sm:$0xff]   ;;  %v2403_v3 = vld [vmem:[%s3471_s3 + $0x57c] ss:$28 sps:$4 sm:$0xff]  }
  0x17   :  { %1639 = vmatpush1.bf16.msra.mxu0 %v2332_v24  ;;  %1680 = vmatpush1.bf16.msra.mxu1 %v2335_v25  ;;  %v2392_v0 = vld [vmem:[%s3471_s3 + $0x230] ss:$28 sps:$4 sm:$0xff]   ;;  %v2398_v4 = vld [vmem:[%s3471_s3 + $0x1f8] ss:$28 sps:$4 sm:$0xff]   ;;  %v2406_v6 = vld [vmem:[%s3471_s3 + $0x1c4] ss:$28 sps:$4 sm:$0xff]  }
  0x18   :  { %1640 = vmatprep.subr.bf16.mxu0 %v2340_v26  ;;  %1681 = vmatprep.subr.bf16.mxu1 %v2343_v27  ;;  %v2395_v1 = vld [vmem:[%s3471_s3 + $0x5b0] ss:$28 sps:$4 sm:$0xff]   ;;  %v2401_v5 = vld [vmem:[%s3471_s3 + $0x578] ss:$28 sps:$4 sm:$0xff]   ;;  %v2409_v7 = vld [vmem:[%s3471_s3 + $0x544] ss:$28 sps:$4 sm:$0xff]  }
  0x19   :  { %v2404_v8 = vld [vmem:[%s3471_s3 + $0x1c0] ss:$28 sps:$4 sm:$0xff]   ;;  %v2412_v10 = vld [vmem:[%s3471_s3 + $0x194] ss:$28 sps:$4 sm:$0xff]  }
  0x1a   :  { %v2407_v9 = vld [vmem:[%s3471_s3 + $0x540] ss:$28 sps:$4 sm:$0xff]   ;;  %v2415_v11 = vld [vmem:[%s3471_s3 + $0x514] ss:$28 sps:$4 sm:$0xff]  }
  0x1b   :  { %1641 = vmatpush1.bf16.msra.mxu0 %v2338_v28  ;;  %1682 = vmatpush1.bf16.msra.mxu1 %v2341_v29 }
  0x1c   :  { %1642 = vmatprep.subr.bf16.mxu0 %v2346_v30  ;;  %1683 = vmatprep.subr.bf16.mxu1 %v2349_v31 }
  0x1f   :  { %1643 = vmatpush1.bf16.msra.mxu0 %v2344_v32  ;;  %1684 = vmatpush1.bf16.msra.mxu1 %v2347_v33 }
  0x20   :  { %1644 = vmatprep.subr.bf16.mxu0 %v2352_v34  ;;  %1685 = vmatprep.subr.bf16.mxu1 %v2355_v35 }
  0x23   :  { %1645 = vmatpush1.bf16.msra.mxu0 %v2350_v36  ;;  %1686 = vmatpush1.bf16.msra.mxu1 %v2353_v37 }
  0x24   :  { %1646 = vmatprep.subr.bf16.mxu0 %v2358_v38  ;;  %1687 = vmatprep.subr.bf16.mxu1 %v2361_v39 }
  0x27   :  { %1647 = vmatpush1.bf16.msra.mxu0 %v2356_v40  ;;  %1688 = vmatpush1.bf16.msra.mxu1 %v2359_v41 }
  0x28   :  { %1648 = vmatprep.subr.bf16.mxu0 %v2364_v42  ;;  %1689 = vmatprep.subr.bf16.mxu1 %v2367_v43 }
  0x2b   :  { %1649 = vmatpush2.bf16.msra.mxu0 %v2362_v44  ;;  %1690 = vmatpush2.bf16.msra.mxu1 %v2365_v45 }
  0x2c   :  { %1650 = vmatprep.subr.bf16.mxu0 %v2370_v46  ;;  %1691 = vmatprep.subr.bf16.mxu1 %v2373_v47 }
  0x2f   :  { %1651 = vmatpush2.bf16.msra.mxu0 %v2368_v48  ;;  %1692 = vmatpush2.bf16.msra.mxu1 %v2371_v49 }
  0x30   :  { %1652 = vmatprep.subr.bf16.mxu0 %v2376_v50  ;;  %1693 = vmatprep.subr.bf16.mxu1 %v2379_v51 }
  0x33   :  { %1653 = vmatpush2.bf16.msra.mxu0 %v2374_v52  ;;  %1694 = vmatpush2.bf16.msra.mxu1 %v2377_v53 }
  0x34   :  { %1654 = vmatprep.subr.bf16.mxu0 %v2382_v54  ;;  %1695 = vmatprep.subr.bf16.mxu1 %v2385_v55 }
  0x37   :  { %1655 = vmatpush2.bf16.msra.mxu0 %v2380_v56  ;;  %1696 = vmatpush2.bf16.msra.mxu1 %v2383_v57 }
  0x38   :  { %1656 = vmatprep.subr.bf16.mxu0 %v2388_v58  ;;  %1697 = vmatprep.subr.bf16.mxu1 %v2391_v59 }
  0x3b   :  { %1657 = vmatpush2.bf16.msra.mxu0 %v2386_v60  ;;  %1698 = vmatpush2.bf16.msra.mxu1 %v2389_v61 }
  0x3c   :  { %1658 = vmatprep.subr.bf16.mxu0 %v2394_v62  ;;  %1699 = vmatprep.subr.bf16.mxu1 %v2397_v63 }
  0x3f   :  { %1659 = vmatpush2.bf16.msra.mxu0 %v2392_v0  ;;  %1700 = vmatpush2.bf16.msra.mxu1 %v2395_v1 }
  0x40   :  { %1660 = vmatprep.subr.bf16.mxu0 %v2400_v2  ;;  %1701 = vmatprep.subr.bf16.mxu1 %v2403_v3 }
  0x43   :  { %1661 = vmatpush2.bf16.msra.mxu0 %v2398_v4  ;;  %1702 = vmatpush2.bf16.msra.mxu1 %v2401_v5 }
  0x44   :  { %1662 = vmatprep.subr.bf16.mxu0 %v2406_v6  ;;  %1703 = vmatprep.subr.bf16.mxu1 %v2409_v7 }
  0x47   :  { %1663 = vmatpush2.bf16.msra.mxu0 %v2404_v8  ;;  %1704 = vmatpush2.bf16.msra.mxu1 %v2407_v9 }
  0x48   :  { %1714 = vmatprep.subr.bf16.mxu0 %v2412_v10  ;;  %1755 = vmatprep.subr.bf16.mxu1 %v2415_v11 }
  0x49   :  { %10 = vsyncpa [#allocation3], 0  ;;  %v33_v12 = vlaneseq  ;;  %v31_v16 = vld [vmem:[%s3470_s2] sm:$0xf]  ;;  %v2410_v42 = vld [vmem:[%s3471_s3 + $0x190] ss:$28 sps:$4 sm:$0xff]  }
  0x4a   :  { %v2413_v43 = vld [vmem:[%s3471_s3 + $0x510] ss:$28 sps:$4 sm:$0xff]   ;;  %v2418_v45 = vld [vmem:[%s3471_s3 + $0x15c] ss:$28 sps:$4 sm:$0xff]   ;;  %v2424_v49 = vld [vmem:[%s3471_s3 + $0x124] ss:$28 sps:$4 sm:$0xff]  }
  0x4b   :  { %v2927_v13 = vshrl.u32 %v33_v12, 7  ;;  %v2421_v46 = vld [vmem:[%s3471_s3 + $0x4dc] ss:$28 sps:$4 sm:$0xff]   ;;  %v2427_v50 = vld [vmem:[%s3471_s3 + $0x4a4] ss:$28 sps:$4 sm:$0xff]   ;;  %vm2006_vm1 = vcmask 130048  }
  0x4c   :  { %v2416_v47 = vld [vmem:[%s3471_s3 + $0x158] ss:$28 sps:$4 sm:$0xff]   ;;  %v2422_v51 = vld [vmem:[%s3471_s3 + $0x120] ss:$28 sps:$4 sm:$0xff]   ;;  %v2430_v53 = vld [vmem:[%s3471_s3 + $0xec] ss:$28 sps:$4 sm:$0xff]  }
  0x4d   :  { %v35_v14 = vsub.s32 0, %v2927_v13  ;;  %v43_v15 = vsub.s32 2, %v2927_v13  ;;  %v39_v17 = vsub.s32 1, %v2927_v13  ;;  %v47_v18 = vsub.s32 3, %v2927_v13  ;;  %v2419_v48 = vld [vmem:[%s3471_s3 + $0x4d8] ss:$28 sps:$4 sm:$0xff]  }
  0x4e   :  { %v2425_v52 = vld [vmem:[%s3471_s3 + $0x4a0] ss:$28 sps:$4 sm:$0xff]   ;;  %v2433_v54 = vld [vmem:[%s3471_s3 + $0x46c] ss:$28 sps:$4 sm:$0xff]   ;;  %v2436_v57 = vld [vmem:[%s3471_s3 + $0xb4] ss:$28 sps:$4 sm:$0xff]  }
  0x4f   :  { %v36_v19 = vrot.slane %v31_v16, %v35_v14  ;;  %v44_v20 = vrot.slane %v31_v16, %v43_v15  ;;  %v40_v21 = vrot.slane %v31_v16, %v39_v17  ;;  %v48_v22 = vrot.slane %v31_v16, %v47_v18  ;;  %v2428_v55 = vld [vmem:[%s3471_s3 + $0xe8] ss:$28 sps:$4 sm:$0xff]   ;;  %v2439_v58 = vld [vmem:[%s3471_s3 + $0x434] ss:$28 sps:$4 sm:$0xff]   ;;  %v2442_v61 = vld [vmem:[%s3471_s3 + $0x7c] ss:$28 sps:$4 sm:$0xff]  }
  0x50   :  { %v2431_v56 = vld [vmem:[%s3471_s3 + $0x468] ss:$28 sps:$4 sm:$0xff]   ;;  %v2434_v59 = vld [vmem:[%s3471_s3 + $0xb0] ss:$28 sps:$4 sm:$0xff]   ;;  %v2445_v62 = vld [vmem:[%s3471_s3 + $0x3fc] ss:$28 sps:$4 sm:$0xff]  }
  0x51   :  { %v2437_v60 = vld [vmem:[%s3471_s3 + $0x430] ss:$28 sps:$4 sm:$0xff]   ;;  %v2440_v63 = vld [vmem:[%s3471_s3 + $0x78] ss:$28 sps:$4 sm:$0xff]   ;;  %v2448_v1 = vld [vmem:[%s3471_s3 + $0x44] ss:$28 sps:$4 sm:$0xff]  }
  0x52   :  { %v2443_v0 = vld [vmem:[%s3471_s3 + $0x3f8] ss:$28 sps:$4 sm:$0xff]   ;;  %v2451_v2 = vld [vmem:[%s3471_s3 + $0x3c4] ss:$28 sps:$4 sm:$0xff]   ;;  %v2454_v5 = vld [vmem:[%s3471_s3 + $0xc] ss:$28 sps:$4 sm:$0xff]  }
  0x53   :  { %v2446_v3 = vld [vmem:[%s3471_s3 + $0x40] ss:$28 sps:$4 sm:$0xff]   ;;  %v2457_v6 = vld [vmem:[%s3471_s3 + $0x38c] ss:$28 sps:$4 sm:$0xff]   ;;  %v2460_v9 = vld [vmem:[%s3471_s3 + $0x354] ss:$28 sps:$4 sm:$0xff]  }
  0x54   :  { %v2449_v4 = vld [vmem:[%s3471_s3 + $0x3c0] ss:$28 sps:$4 sm:$0xff]   ;;  %v2452_v7 = vld [vmem:[%s3471_s3 + $0x8] ss:$28 sps:$4 sm:$0xff]   ;;  %v2463_v10 = vld [vmem:[%s3471_s3 + $0x6d4] ss:$28 sps:$4 sm:$0xff]  }
  0x55   :  { %v2455_v8 = vld [vmem:[%s3471_s3 + $0x388] ss:$28 sps:$4 sm:$0xff]   ;;  %v2458_v11 = vld [vmem:[%s3471_s3 + $0x350] ss:$28 sps:$4 sm:$0xff]   ;;  %v2466_v16 = vld [vmem:[%s3471_s3 + $0x31c] ss:$28 sps:$4 sm:$0xff]  }
  0x56   :  { %v2461_v12 = vld [vmem:[%s3471_s3 + $0x6d0] ss:$28 sps:$4 sm:$0xff]  }
  0xca   :  { %v131_v23 = vpop.f32.mrf.mxu0  ;;  %v172_v24 = vpop.f32.mrf.mxu1 }
  0xcb   :  { %v132_v25 = vadd.f32 %v131_v23, %v36_v19  ;;  %v173_v26 = vadd.f32 %v172_v24, %v44_v20  ;;  %v2469_v19 = vld [vmem:[%s3471_s3 + $0x69c] ss:$28 sps:$4 sm:$0xff]   ;;  %v2475_v23 = vld [vmem:[%s3471_s3 + $0x664] ss:$28 sps:$4 sm:$0xff]  }
  0xcc   :  { %v133_v27 = vpop.f32.mrf.mxu0  ;;  %v174_v28 = vpop.f32.mrf.mxu1  ;;  %v2464_v20 = vld [vmem:[%s3471_s3 + $0x318] ss:$28 sps:$4 sm:$0xff]   ;;  %v2470_v24 = vld [vmem:[%s3471_s3 + $0x2e0] ss:$28 sps:$4 sm:$0xff]  }
  0xcd   :  { %v181_v29 = vmax.f32 %v173_v26, 0.0  ;;  %v134_v30 = vadd.f32 %v133_v27, %v40_v21  ;;  %v175_v31 = vadd.f32 %v174_v28, %v48_v22  ;;  %v179_v32 = vmax.f32 %v132_v25, 0.0  ;;  %v2467_v21 = vld [vmem:[%s3471_s3 + $0x698] ss:$28 sps:$4 sm:$0xff]   ;;  %v2472_v22 = vld [vmem:[%s3471_s3 + $0x2e4] ss:$28 sps:$4 sm:$0xff]  }
  0xce   :  { %v135_v33 = vpop.f32.mrf.mxu0  ;;  %v176_v34 = vpop.f32.mrf.mxu1  ;;  %v2473_v25 = vld [vmem:[%s3471_s3 + $0x660] ss:$28 sps:$4 sm:$0xff]   ;;  %v2478_v26 = vld [vmem:[%s3471_s3 + $0x2ac] ss:$28 sps:$4 sm:$0xff]  }
  0xcf   :  { %v180_v35 = vmax.f32 %v134_v30, 0.0  ;;  %v182_v36 = vmax.f32 %v175_v31, 0.0  ;;  %v2944_v37 = vpack.c.bf16 %v181_v29, %v181_v29  ;;  %v2956_v44 = vpack.c.bf16 %v179_v32, %v179_v32  ;;  %v2481_v27 = vld [vmem:[%s3471_s3 + $0x62c] ss:$28 sps:$4 sm:$0xff]   ;;  %v2484_v30 = vld [vmem:[%s3471_s3 + $0x274] ss:$28 sps:$4 sm:$0xff]  }
  0xd0   :  { %v136_v38 = vpop.f32.mrf.mxu0  ;;  %v177_v39 = vpop.f32.mrf.mxu1  ;;  %v2476_v28 = vld [vmem:[%s3471_s3 + $0x2a8] ss:$28 sps:$4 sm:$0xff]   ;;  %v2487_v31 = vld [vmem:[%s3471_s3 + $0x5f4] ss:$28 sps:$4 sm:$0xff]   ;;  %v2490_v34 = vld [vmem:[%s3471_s3 + $0x23c] ss:$28 sps:$4 sm:$0xff]  }
  0xd1   :  { %v2946_v40 = vpack.c.bf16 %v180_v35, %v180_v35  ;;  %v2948_v41 = vpack.c.bf16 %v182_v36, %v182_v36  ;;  %v2479_v29 = vld [vmem:[%s3471_s3 + $0x628] ss:$28 sps:$4 sm:$0xff]   ;;  %v2482_v32 = vld [vmem:[%s3471_s3 + $0x270] ss:$28 sps:$4 sm:$0xff]   ;;  %v2493_v35 = vld [vmem:[%s3471_s3 + $0x5bc] ss:$28 sps:$4 sm:$0xff]  }
  0xd2   :  { %v2485_v33 = vld [vmem:[%s3471_s3 + $0x5f0] ss:$28 sps:$4 sm:$0xff]   ;;  %v2488_v36 = vld [vmem:[%s3471_s3 + $0x238] ss:$28 sps:$4 sm:$0xff]   ;;  %v2496_v39 = vld [vmem:[%s3471_s3 + $0x204] ss:$28 sps:$4 sm:$0xff]  }
  0xd3   :  { %1664 = vmatprep.mubr.bf16.mxu0 %v2946_v40  ;;  %1705 = vmatprep.mubr.bf16.mxu1 %v2948_v41  ;;  %v2491_v38 = vld [vmem:[%s3471_s3 + $0x5b8] ss:$28 sps:$4 sm:$0xff]  }
  0xd4   :  { %1665 = vmatmul.mubr.bf16.vlgmr.msra.gmra.mxu0 %v2956_v44  ;;  %1706 = vmatmul.mubr.bf16.vlgmr.msra.gmra.mxu1 %v2944_v37 }
  0xd5   :  { %1715 = vmatpush1.bf16.msra.mxu0 %v2410_v42  ;;  %1756 = vmatpush1.bf16.msra.mxu1 %v2413_v43  ;;  %v2499_v42 = vld [vmem:[%s3471_s3 + $0x584] ss:$28 sps:$4 sm:$0xff]  }
  0xd6   :  { %1746 = vmatprep.mubr.bf16.mxu0 %v2946_v40  ;;  %1787 = vmatprep.mubr.bf16.mxu1 %v2948_v41  ;;  %v2494_v43 = vld [vmem:[%s3471_s3 + $0x200] ss:$28 sps:$4 sm:$0xff]  }
  0xd7   :  { %1716 = vmatprep.subr.bf16.mxu0 %v2418_v45  ;;  %1757 = vmatprep.subr.bf16.mxu1 %v2421_v46  ;;  %v2497_v45 = vld [vmem:[%s3471_s3 + $0x580] ss:$28 sps:$4 sm:$0xff]   ;;  %v2502_v46 = vld [vmem:[%s3471_s3 + $0x1cc] ss:$28 sps:$4 sm:$0xff]  }
  0xd9   :  { %1717 = vmatpush1.bf16.msra.mxu0 %v2416_v47  ;;  %1758 = vmatpush1.bf16.msra.mxu1 %v2419_v48  ;;  %v2505_v47 = vld [vmem:[%s3471_s3 + $0x54c] ss:$28 sps:$4 sm:$0xff]  }
  0xda   :  { %1718 = vmatprep.subr.bf16.mxu0 %v2424_v49  ;;  %1759 = vmatprep.subr.bf16.mxu1 %v2427_v50  ;;  %v2500_v48 = vld [vmem:[%s3471_s3 + $0x1c8] ss:$28 sps:$4 sm:$0xff]   ;;  %v2508_v50 = vld [vmem:[%s3471_s3 + $0x19c] ss:$28 sps:$4 sm:$0xff]  }
  0xdb   :  { %v2503_v49 = vld [vmem:[%s3471_s3 + $0x548] ss:$28 sps:$4 sm:$0xff]  }
  0xdd   :  { %1719 = vmatpush1.bf16.msra.mxu0 %v2422_v51  ;;  %1760 = vmatpush1.bf16.msra.mxu1 %v2425_v52  ;;  %v2511_v51 = vld [vmem:[%s3471_s3 + $0x51c] ss:$28 sps:$4 sm:$0xff]  }
  0xde   :  { %1720 = vmatprep.subr.bf16.mxu0 %v2430_v53  ;;  %1761 = vmatprep.subr.bf16.mxu1 %v2433_v54  ;;  %v2506_v52 = vld [vmem:[%s3471_s3 + $0x198] ss:$28 sps:$4 sm:$0xff]   ;;  %v2514_v54 = vld [vmem:[%s3471_s3 + $0x164] ss:$28 sps:$4 sm:$0xff]  }
  0xdf   :  { %v2509_v53 = vld [vmem:[%s3471_s3 + $0x518] ss:$28 sps:$4 sm:$0xff]  }
  0xe1   :  { %1721 = vmatpush1.bf16.msra.mxu0 %v2428_v55  ;;  %1762 = vmatpush1.bf16.msra.mxu1 %v2431_v56  ;;  %v2517_v55 = vld [vmem:[%s3471_s3 + $0x4e4] ss:$28 sps:$4 sm:$0xff]  }
  0xe2   :  { %1722 = vmatprep.subr.bf16.mxu0 %v2436_v57  ;;  %1763 = vmatprep.subr.bf16.mxu1 %v2439_v58  ;;  %v2512_v56 = vld [vmem:[%s3471_s3 + $0x160] ss:$28 sps:$4 sm:$0xff]   ;;  %v2520_v58 = vld [vmem:[%s3471_s3 + $0x12c] ss:$28 sps:$4 sm:$0xff]  }
  0xe3   :  { %v2515_v57 = vld [vmem:[%s3471_s3 + $0x4e0] ss:$28 sps:$4 sm:$0xff]  }
  0xe5   :  { %1723 = vmatpush1.bf16.msra.mxu0 %v2434_v59  ;;  %1764 = vmatpush1.bf16.msra.mxu1 %v2437_v60  ;;  %v2523_v59 = vld [vmem:[%s3471_s3 + $0x4ac] ss:$28 sps:$4 sm:$0xff]  }
  0xe6   :  { %1724 = vmatprep.subr.bf16.mxu0 %v2442_v61  ;;  %1765 = vmatprep.subr.bf16.mxu1 %v2445_v62  ;;  %v2518_v60 = vld [vmem:[%s3471_s3 + $0x128] ss:$28 sps:$4 sm:$0xff]   ;;  %v2526_v62 = vld [vmem:[%s3471_s3 + $0xf4] ss:$28 sps:$4 sm:$0xff]  }
  0xe7   :  { %v2521_v61 = vld [vmem:[%s3471_s3 + $0x4a8] ss:$28 sps:$4 sm:$0xff]  }
  0xe9   :  { %1725 = vmatpush1.bf16.msra.mxu0 %v2440_v63  ;;  %1766 = vmatpush1.bf16.msra.mxu1 %v2443_v0  ;;  %v2529_v63 = vld [vmem:[%s3471_s3 + $0x474] ss:$28 sps:$4 sm:$0xff]  }
  0xea   :  { %1726 = vmatprep.subr.bf16.mxu0 %v2448_v1  ;;  %1767 = vmatprep.subr.bf16.mxu1 %v2451_v2  ;;  %v2524_v0 = vld [vmem:[%s3471_s3 + $0xf0] ss:$28 sps:$4 sm:$0xff]   ;;  %v2532_v2 = vld [vmem:[%s3471_s3 + $0xbc] ss:$28 sps:$4 sm:$0xff]  }
  0xeb   :  { %v2527_v1 = vld [vmem:[%s3471_s3 + $0x470] ss:$28 sps:$4 sm:$0xff]  }
  0xed   :  { %1727 = vmatpush1.bf16.msra.mxu0 %v2446_v3  ;;  %1768 = vmatpush1.bf16.msra.mxu1 %v2449_v4  ;;  %v2535_v3 = vld [vmem:[%s3471_s3 + $0x43c] ss:$28 sps:$4 sm:$0xff]  }
  0xee   :  { %1728 = vmatprep.subr.bf16.mxu0 %v2454_v5  ;;  %1769 = vmatprep.subr.bf16.mxu1 %v2457_v6  ;;  %v2530_v4 = vld [vmem:[%s3471_s3 + $0xb8] ss:$28 sps:$4 sm:$0xff]   ;;  %v2538_v6 = vld [vmem:[%s3471_s3 + $0x84] ss:$28 sps:$4 sm:$0xff]  }
  0xef   :  { %v2533_v5 = vld [vmem:[%s3471_s3 + $0x438] ss:$28 sps:$4 sm:$0xff]  }
  0xf1   :  { %1729 = vmatpush1.bf16.msra.mxu0 %v2452_v7  ;;  %1770 = vmatpush1.bf16.msra.mxu1 %v2455_v8  ;;  %v2541_v7 = vld [vmem:[%s3471_s3 + $0x404] ss:$28 sps:$4 sm:$0xff]  }
  0xf2   :  { %1730 = vmatprep.subr.bf16.mxu0 %v2460_v9  ;;  %1771 = vmatprep.subr.bf16.mxu1 %v2463_v10  ;;  %v2536_v8 = vld [vmem:[%s3471_s3 + $0x80] ss:$28 sps:$4 sm:$0xff]   ;;  %v2544_v10 = vld [vmem:[%s3471_s3 + $0x4c] ss:$28 sps:$4 sm:$0xff]  }
  0xf3   :  { %v2539_v9 = vld [vmem:[%s3471_s3 + $0x400] ss:$28 sps:$4 sm:$0xff]  }
  0xf5   :  { %1731 = vmatpush2.bf16.msra.mxu0 %v2458_v11  ;;  %1772 = vmatpush2.bf16.msra.mxu1 %v2461_v12  ;;  %v2547_v11 = vld [vmem:[%s3471_s3 + $0x3cc] ss:$28 sps:$4 sm:$0xff]  }
  0xf6   :  { %1732 = vmatprep.subr.bf16.mxu0 %v2466_v16  ;;  %1773 = vmatprep.subr.bf16.mxu1 %v2469_v19  ;;  %v2542_v12 = vld [vmem:[%s3471_s3 + $0x48] ss:$28 sps:$4 sm:$0xff]   ;;  %v2550_v19 = vld [vmem:[%s3471_s3 + $0x14] ss:$28 sps:$4 sm:$0xff]  }
  0xf7   :  { %v2545_v16 = vld [vmem:[%s3471_s3 + $0x3c8] ss:$28 sps:$4 sm:$0xff]  }
  0xf9   :  { %1733 = vmatpush2.bf16.msra.mxu0 %v2464_v20  ;;  %1774 = vmatpush2.bf16.msra.mxu1 %v2467_v21  ;;  %v2553_v20 = vld [vmem:[%s3471_s3 + $0x394] ss:$28 sps:$4 sm:$0xff]  }
  0xfa   :  { %1734 = vmatprep.subr.bf16.mxu0 %v2472_v22  ;;  %1775 = vmatprep.subr.bf16.mxu1 %v2475_v23  ;;  %v2548_v21 = vld [vmem:[%s3471_s3 + $0x10] ss:$28 sps:$4 sm:$0xff]   ;;  %v2556_v23 = vld [vmem:[%s3471_s3 + $0x35c] ss:$28 sps:$4 sm:$0xff]  }
  0xfb   :  { %v2551_v22 = vld [vmem:[%s3471_s3 + $0x390] ss:$28 sps:$4 sm:$0xff]  }
  0xfd   :  { %1735 = vmatpush2.bf16.msra.mxu0 %v2470_v24  ;;  %1776 = vmatpush2.bf16.msra.mxu1 %v2473_v25  ;;  %v2559_v24 = vld [vmem:[%s3471_s3 + $0x6dc] ss:$28 sps:$4 sm:$0xff]  }
  0xfe   :  { %1736 = vmatprep.subr.bf16.mxu0 %v2478_v26  ;;  %1777 = vmatprep.subr.bf16.mxu1 %v2481_v27  ;;  %v2554_v25 = vld [vmem:[%s3471_s3 + $0x358] ss:$28 sps:$4 sm:$0xff]   ;;  %v2562_v27 = vld [vmem:[%s3471_s3 + $0x324] ss:$28 sps:$4 sm:$0xff]  }
  0xff   :  { %v2557_v26 = vld [vmem:[%s3471_s3 + $0x6d8] ss:$28 sps:$4 sm:$0xff]  }
 0x101   :  { %1737 = vmatpush2.bf16.msra.mxu0 %v2476_v28  ;;  %1778 = vmatpush2.bf16.msra.mxu1 %v2479_v29  ;;  %v2565_v28 = vld [vmem:[%s3471_s3 + $0x6a4] ss:$28 sps:$4 sm:$0xff]  }
 0x102   :  { %1738 = vmatprep.subr.bf16.mxu0 %v2484_v30  ;;  %1779 = vmatprep.subr.bf16.mxu1 %v2487_v31  ;;  %v2560_v29 = vld [vmem:[%s3471_s3 + $0x320] ss:$28 sps:$4 sm:$0xff]   ;;  %v2568_v31 = vld [vmem:[%s3471_s3 + $0x2ec] ss:$28 sps:$4 sm:$0xff]  }
 0x103   :  { %v2563_v30 = vld [vmem:[%s3471_s3 + $0x6a0] ss:$28 sps:$4 sm:$0xff]  }
 0x105   :  { %1739 = vmatpush2.bf16.msra.mxu0 %v2482_v32  ;;  %1780 = vmatpush2.bf16.msra.mxu1 %v2485_v33  ;;  %v2571_v32 = vld [vmem:[%s3471_s3 + $0x66c] ss:$28 sps:$4 sm:$0xff]  }
 0x106   :  { %1740 = vmatprep.subr.bf16.mxu0 %v2490_v34  ;;  %1781 = vmatprep.subr.bf16.mxu1 %v2493_v35  ;;  %v2566_v33 = vld [vmem:[%s3471_s3 + $0x2e8] ss:$28 sps:$4 sm:$0xff]   ;;  %v2574_v35 = vld [vmem:[%s3471_s3 + $0x2b4] ss:$28 sps:$4 sm:$0xff]  }
 0x107   :  { %v2569_v34 = vld [vmem:[%s3471_s3 + $0x668] ss:$28 sps:$4 sm:$0xff]  }
 0x109   :  { %1741 = vmatpush2.bf16.msra.mxu0 %v2488_v36  ;;  %1782 = vmatpush2.bf16.msra.mxu1 %v2491_v38  ;;  %v2577_v36 = vld [vmem:[%s3471_s3 + $0x634] ss:$28 sps:$4 sm:$0xff]  }
 0x10a   :  { %1742 = vmatprep.subr.bf16.mxu0 %v2496_v39  ;;  %1783 = vmatprep.subr.bf16.mxu1 %v2499_v42  ;;  %v2572_v38 = vld [vmem:[%s3471_s3 + $0x2b0] ss:$28 sps:$4 sm:$0xff]   ;;  %v2580_v42 = vld [vmem:[%s3471_s3 + $0x27c] ss:$28 sps:$4 sm:$0xff]  }
 0x10b   :  { %v2575_v39 = vld [vmem:[%s3471_s3 + $0x630] ss:$28 sps:$4 sm:$0xff]  }
 0x10d   :  { %1743 = vmatpush2.bf16.msra.mxu0 %v2494_v43  ;;  %1784 = vmatpush2.bf16.msra.mxu1 %v2497_v45  ;;  %v2583_v43 = vld [vmem:[%s3471_s3 + $0x5fc] ss:$28 sps:$4 sm:$0xff]  }
 0x10e   :  { %1744 = vmatprep.subr.bf16.mxu0 %v2502_v46  ;;  %1785 = vmatprep.subr.bf16.mxu1 %v2505_v47  ;;  %v2578_v45 = vld [vmem:[%s3471_s3 + $0x278] ss:$28 sps:$4 sm:$0xff]   ;;  %v2586_v47 = vld [vmem:[%s3471_s3 + $0x244] ss:$28 sps:$4 sm:$0xff]  }
 0x10f   :  { %v2581_v46 = vld [vmem:[%s3471_s3 + $0x5f8] ss:$28 sps:$4 sm:$0xff]  }
 0x111   :  { %1745 = vmatpush2.bf16.msra.mxu0 %v2500_v48  ;;  %1786 = vmatpush2.bf16.msra.mxu1 %v2503_v49  ;;  %v2589_v48 = vld [vmem:[%s3471_s3 + $0x5c4] ss:$28 sps:$4 sm:$0xff]  }
 0x112   :  { %1796 = vmatprep.subr.bf16.mxu0 %v2508_v50  ;;  %1837 = vmatprep.subr.bf16.mxu1 %v2511_v51  ;;  %v2584_v49 = vld [vmem:[%s3471_s3 + $0x240] ss:$28 sps:$4 sm:$0xff]   ;;  %v2592_v51 = vld [vmem:[%s3471_s3 + $0x20c] ss:$28 sps:$4 sm:$0xff]  }
 0x113   :  { %v2587_v50 = vld [vmem:[%s3471_s3 + $0x5c0] ss:$28 sps:$4 sm:$0xff]  }
 0x114   :  { %1747 = vmatmul.mubr.bf16.vlgmr.msra.gmra.mxu0 %v2956_v44  ;;  %1788 = vmatmul.mubr.bf16.vlgmr.msra.gmra.mxu1 %v2944_v37 }
 0x115   :  { %1797 = vmatpush1.bf16.msra.mxu0 %v2506_v52  ;;  %1828 = vmatprep.mubr.bf16.mxu0 %v2946_v40  ;;  %v2595_v52 = vld [vmem:[%s3471_s3 + $0x58c] ss:$28 sps:$4 sm:$0xff]  }
 0x116   :  { %1838 = vmatpush1.bf16.msra.mxu1 %v2509_v53  ;;  %1869 = vmatprep.mubr.bf16.mxu1 %v2948_v41  ;;  %v2590_v53 = vld [vmem:[%s3471_s3 + $0x208] ss:$28 sps:$4 sm:$0xff]  }
 0x117   :  { %1798 = vmatprep.subr.bf16.mxu0 %v2514_v54  ;;  %1839 = vmatprep.subr.bf16.mxu1 %v2517_v55  ;;  %v2593_v54 = vld [vmem:[%s3471_s3 + $0x588] ss:$28 sps:$4 sm:$0xff]   ;;  %v2598_v55 = vld [vmem:[%s3471_s3 + $0x1d4] ss:$28 sps:$4 sm:$0xff]  }
 0x119   :  { %1799 = vmatpush1.bf16.msra.mxu0 %v2512_v56  ;;  %v2601_v56 = vld [vmem:[%s3471_s3 + $0x554] ss:$28 sps:$4 sm:$0xff]  }
 0x11a   :  { %1840 = vmatpush1.bf16.msra.mxu1 %v2515_v57  ;;  %1800 = vmatprep.subr.bf16.mxu0 %v2520_v58  ;;  %v2596_v57 = vld [vmem:[%s3471_s3 + $0x1d0] ss:$28 sps:$4 sm:$0xff]  }
 0x11b   :  { %1841 = vmatprep.subr.bf16.mxu1 %v2523_v59  ;;  %v2599_v58 = vld [vmem:[%s3471_s3 + $0x550] ss:$28 sps:$4 sm:$0xff]   ;;  %v2602_v59 = vld [vmem:[%s3471_s3 + $0x360] ss:$28 sps:$4 sm:$0xff]  }
 0x11d   :  { %1801 = vmatpush1.bf16.msra.mxu0 %v2518_v60  ;;  %v2603_v60 = vld [vmem:[%s3471_s3 + $0x6e0] ss:$28 sps:$4 sm:$0xff]  }
 0x11e   :  { %1842 = vmatpush1.bf16.msra.mxu1 %v2521_v61  ;;  %1802 = vmatprep.subr.bf16.mxu0 %v2526_v62  ;;  %v2604_v61 = vld [vmem:[%s3471_s3 + $0x1a0] ss:$28 sps:$4 sm:$0xff]  }
 0x11f   :  { %1843 = vmatprep.subr.bf16.mxu1 %v2529_v63  ;;  %v2605_v62 = vld [vmem:[%s3471_s3 + $0x520] ss:$28 sps:$4 sm:$0xff]   ;;  %v2606_v63 = vld [vmem:[%s3471_s3 + $0x328] ss:$28 sps:$4 sm:$0xff]  }
 0x121   :  { %1803 = vmatpush1.bf16.msra.mxu0 %v2524_v0  ;;  %v2607_v0 = vld [vmem:[%s3471_s3 + $0x6a8] ss:$28 sps:$4 sm:$0xff]  }
 0x122   :  { %1844 = vmatpush1.bf16.msra.mxu1 %v2527_v1  ;;  %1804 = vmatprep.subr.bf16.mxu0 %v2532_v2  ;;  %v2608_v1 = vld [vmem:[%s3471_s3 + $0x168] ss:$28 sps:$4 sm:$0xff]  }
 0x123   :  { %1845 = vmatprep.subr.bf16.mxu1 %v2535_v3  ;;  %v2609_v2 = vld [vmem:[%s3471_s3 + $0x4e8] ss:$28 sps:$4 sm:$0xff]   ;;  %v2610_v3 = vld [vmem:[%s3471_s3 + $0x2f0] ss:$28 sps:$4 sm:$0xff]  }
 0x125   :  { %1805 = vmatpush1.bf16.msra.mxu0 %v2530_v4  ;;  %v2611_v4 = vld [vmem:[%s3471_s3 + $0x670] ss:$28 sps:$4 sm:$0xff]  }
 0x126   :  { %1846 = vmatpush1.bf16.msra.mxu1 %v2533_v5  ;;  %1806 = vmatprep.subr.bf16.mxu0 %v2538_v6  ;;  %v2613_v5 = vld [vmem:[%s3471_s3 + $0x4b0] ss:$28 sps:$4 sm:$0xff]   ;;  %v2615_v6 = vld [vmem:[%s3471_s3 + $0x638] ss:$28 sps:$4 sm:$0xff]  }
 0x127   :  { %1847 = vmatprep.subr.bf16.mxu1 %v2541_v7  ;;  %v2616_v7 = vld [vmem:[%s3471_s3 + $0xf8] ss:$28 sps:$4 sm:$0xff]  }
 0x129   :  { %1807 = vmatpush1.bf16.msra.mxu0 %v2536_v8  ;;  %v2617_v8 = vld [vmem:[%s3471_s3 + $0x478] ss:$28 sps:$4 sm:$0xff]  }
 0x12a   :  { %1848 = vmatpush1.bf16.msra.mxu1 %v2539_v9  ;;  %1808 = vmatprep.subr.bf16.mxu0 %v2544_v10  ;;  %v2618_v9 = vld [vmem:[%s3471_s3 + $0x280] ss:$28 sps:$4 sm:$0xff]  }
 0x12b   :  { %1849 = vmatprep.subr.bf16.mxu1 %v2547_v11  ;;  %v2619_v10 = vld [vmem:[%s3471_s3 + $0x600] ss:$28 sps:$4 sm:$0xff]  }
 0x12c   :  { %v2620_v11 = vld [vmem:[%s3471_s3 + $0xc0] ss:$28 sps:$4 sm:$0xff]  }
 0x12d   :  { %1809 = vmatpush1.bf16.msra.mxu0 %v2542_v12  ;;  %v2621_v12 = vld [vmem:[%s3471_s3 + $0x440] ss:$28 sps:$4 sm:$0xff]  }
 0x12e   :  { %1850 = vmatpush1.bf16.msra.mxu1 %v2545_v16  ;;  %1810 = vmatprep.subr.bf16.mxu0 %v2550_v19  ;;  %v2622_v16 = vld [vmem:[%s3471_s3 + $0x248] ss:$28 sps:$4 sm:$0xff]  }
 0x12f   :  { %1851 = vmatprep.subr.bf16.mxu1 %v2553_v20  ;;  %v2623_v19 = vld [vmem:[%s3471_s3 + $0x5c8] ss:$28 sps:$4 sm:$0xff]  }
 0x130   :  { %v2624_v20 = vld [vmem:[%s3471_s3 + $0x88] ss:$28 sps:$4 sm:$0xff]  }
 0x131   :  { %1811 = vmatpush1.bf16.msra.mxu0 %v2548_v21  ;;  %v2625_v21 = vld [vmem:[%s3471_s3 + $0x408] ss:$28 sps:$4 sm:$0xff]  }
 0x132   :  { %1852 = vmatpush1.bf16.msra.mxu1 %v2551_v22  ;;  %1812 = vmatprep.subr.bf16.mxu0 %v2556_v23  ;;  %v2626_v22 = vld [vmem:[%s3471_s3 + $0x210] ss:$28 sps:$4 sm:$0xff]  }
 0x133   :  { %1853 = vmatprep.subr.bf16.mxu1 %v2559_v24  ;;  %v2627_v23 = vld [vmem:[%s3471_s3 + $0x590] ss:$28 sps:$4 sm:$0xff]  }
 0x134   :  { %v2628_v24 = vld [vmem:[%s3471_s3 + $0x50] ss:$28 sps:$4 sm:$0xff]  }
 0x135   :  { %1813 = vmatpush2.bf16.msra.mxu0 %v2554_v25  ;;  %v2629_v25 = vld [vmem:[%s3471_s3 + $0x3d0] ss:$28 sps:$4 sm:$0xff]  }
 0x136   :  { %1854 = vmatpush2.bf16.msra.mxu1 %v2557_v26  ;;  %1814 = vmatprep.subr.bf16.mxu0 %v2562_v27  ;;  %v2630_v26 = vld [vmem:[%s3471_s3 + $0x1d8] ss:$28 sps:$4 sm:$0xff]  }
 0x137   :  { %1855 = vmatprep.subr.bf16.mxu1 %v2565_v28  ;;  %v2631_v27 = vld [vmem:[%s3471_s3 + $0x558] ss:$28 sps:$4 sm:$0xff]  }
 0x138   :  { %v2632_v28 = vld [vmem:[%s3471_s3 + $0x18] ss:$28 sps:$4 sm:$0xff]  }
 0x139   :  { %1815 = vmatpush2.bf16.msra.mxu0 %v2560_v29  ;;  %v2633_v29 = vld [vmem:[%s3471_s3 + $0x398] ss:$28 sps:$4 sm:$0xff]  }
 0x13a   :  { %1856 = vmatpush2.bf16.msra.mxu1 %v2563_v30  ;;  %1816 = vmatprep.subr.bf16.mxu0 %v2568_v31  ;;  %v3445_v30 = vld [vmem:[%s3472_s4] sm:$0x7f] }
 0x13b   :  { %1857 = vmatprep.subr.bf16.mxu1 %v2571_v32  ;;  %v448_v31 = vrot.slane %v3445_v30, %v35_v14  ;;  %v452_v32 = vrot.slane %v3445_v30, %v39_v17 }
 0x13d   :  { %1817 = vmatpush2.bf16.msra.mxu0 %v2566_v33 }
 0x13e   :  { %1858 = vmatpush2.bf16.msra.mxu1 %v2569_v34  ;;  %1818 = vmatprep.subr.bf16.mxu0 %v2574_v35 }
 0x13f   :  { %1859 = vmatprep.subr.bf16.mxu1 %v2577_v36 }
 0x141   :  { %1819 = vmatpush2.bf16.msra.mxu0 %v2572_v38 }
 0x142   :  { %1860 = vmatpush2.bf16.msra.mxu1 %v2575_v39  ;;  %1820 = vmatprep.subr.bf16.mxu0 %v2580_v42 }
 0x143   :  { %1861 = vmatprep.subr.bf16.mxu1 %v2583_v43 }
 0x145   :  { %1821 = vmatpush2.bf16.msra.mxu0 %v2578_v45 }
 0x146   :  { %1862 = vmatpush2.bf16.msra.mxu1 %v2581_v46  ;;  %1822 = vmatprep.subr.bf16.mxu0 %v2586_v47 }
 0x147   :  { %1863 = vmatprep.subr.bf16.mxu1 %v2589_v48 }
 0x149   :  { %1823 = vmatpush2.bf16.msra.mxu0 %v2584_v49 }
 0x14a   :  { %1864 = vmatpush2.bf16.msra.mxu1 %v2587_v50  ;;  %1824 = vmatprep.subr.bf16.mxu0 %v2592_v51 }
 0x14b   :  { %1865 = vmatprep.subr.bf16.mxu1 %v2595_v52 }
 0x14d   :  { %1825 = vmatpush2.bf16.msra.mxu0 %v2590_v53 }
 0x14e   :  { %1866 = vmatpush2.bf16.msra.mxu1 %v2593_v54  ;;  %1826 = vmatprep.subr.bf16.mxu0 %v2598_v55 }
 0x14f   :  { %1867 = vmatprep.subr.bf16.mxu1 %v2601_v56 }
 0x151   :  { %1827 = vmatpush2.bf16.msra.mxu0 %v2596_v57  ;;  %v456_v57 = vrot.slane %v3445_v30, %v43_v15 }
 0x152   :  { %1868 = vmatpush2.bf16.msra.mxu1 %v2599_v58  ;;  %2256 = vmatprep.subr.bf16.mxu0 %v2602_v59  ;;  %v460_v58 = vrot.slane %v3445_v30, %v47_v18 }
 0x153   :  { %2278 = vmatprep.subr.bf16.mxu1 %v2603_v60 }
 0x154   :  { %1829 = vmatmul.mubr.bf16.vlgmr.msra.gmra.mxu0 %v2956_v44 }
 0x155   :  { %1870 = vmatmul.mubr.bf16.vlgmr.msra.gmra.mxu1 %v2944_v37  ;;  %2257 = vmatpush3.bf16.msra.mxu0 %v2604_v61 }
 0x156   :  { %1910 = vmatprep.mubr.bf16.mxu0 %v2946_v40  ;;  %2279 = vmatpush3.bf16.msra.mxu1 %v2605_v62  ;;  %v2612_v40 = vld [vmem:[%s3471_s3 + $0x130] ss:$28 sps:$4 sm:$0xff]  }
 0x157   :  { %1950 = vmatprep.mubr.bf16.mxu1 %v2948_v41  ;;  %2258 = vmatprep.subr.bf16.mxu0 %v2606_v63  ;;  %v2614_v41 = vld [vmem:[%s3471_s3 + $0x2b8] ss:$28 sps:$4 sm:$0xff]   ;;  %s2671_s3 = smov [#allocation2]  }
 0x158   :  { %2280 = vmatprep.subr.bf16.mxu1 %v2607_v0  ;;  %s2014_s4 = sshll.u32 %s2671_s3, 4  ;;  %s2015_s4 = int_to_ptr.vmem [resolvable:$true] %s2014_s4 }
 0x159   :  { %2259 = vmatpush3.bf16.msra.mxu0 %v2608_v1  ;;  %s2648_s0 = scalar_lea.vmem %s2015_s4, 896  ;;  %p2653_p1 = scmp.lt.s32.totalorder %s2015_s4, %s2015_s4 }
 0x15a   :  { %2281 = vmatpush3.bf16.msra.mxu1 %v2609_v2  ;;  %2260 = vmatprep.subr.bf16.mxu0 %v2610_v3  ;;  %p2649_p0 = scmp.ne.s32.totalorder %s2015_s4, %s2648_s0  ;;  %p2654_p2 = scmp.lt.s32.totalorder %s2648_s0, %s2648_s0 }
 0x15b   :  { %2282 = vmatprep.subr.bf16.mxu1 %v2611_v4 }
 0x15c   :  { %p2655_p3 = por %p2654_p2, %p2653_p1 }
 0x15d   :  { %2261 = vmatpush3.bf16.msra.mxu0 %v2612_v40 }
 0x15e   :  { %2283 = vmatpush3.bf16.msra.mxu1 %v2613_v5  ;;  %2262 = vmatprep.subr.bf16.mxu0 %v2614_v41  ;;  %p2656_p4 = pnand %p2655_p3, %p2649_p0 }
 0x15f   :  { %2284 = vmatprep.subr.bf16.mxu1 %v2615_v6 }
 0x161   :  { %2263 = vmatpush3.bf16.msra.mxu0 %v2616_v7 }
 0x162   :  { %2285 = vmatpush3.bf16.msra.mxu1 %v2617_v8  ;;  %2264 = vmatprep.subr.bf16.mxu0 %v2618_v9 }
 0x163   :  { %2286 = vmatprep.subr.bf16.mxu1 %v2619_v10 }
 0x165   :  { %2265 = vmatpush3.bf16.msra.mxu0 %v2620_v11 }
 0x166   :  { %2287 = vmatpush3.bf16.msra.mxu1 %v2621_v12  ;;  %2266 = vmatprep.subr.bf16.mxu0 %v2622_v16 }
 0x167   :  { %2288 = vmatprep.subr.bf16.mxu1 %v2623_v19 }
 0x169   :  { %2267 = vmatpush3.bf16.msra.mxu0 %v2624_v20  ;;  %v463_v20 = vsub.s32 4, %v2927_v13 }
 0x16a   :  { %2289 = vmatpush3.bf16.msra.mxu1 %v2625_v21  ;;  %2268 = vmatprep.subr.bf16.mxu0 %v2626_v22  ;;  %v467_v21 = vsub.s32 5, %v2927_v13 }
 0x16b   :  { %2290 = vmatprep.subr.bf16.mxu1 %v2627_v23  ;;  %v464_v22 = vrot.slane %v3445_v30, %v463_v20 }
 0x16c   :  { %v468_v23 = vrot.slane %v3445_v30, %v467_v21 }
 0x16d   :  { %2269 = vmatpush3.bf16.msra.mxu0 %v2628_v24 }
 0x16e   :  { %2291 = vmatpush3.bf16.msra.mxu1 %v2629_v25  ;;  %2270 = vmatprep.subr.bf16.mxu0 %v2630_v26 }
 0x16f   :  { %2292 = vmatprep.subr.bf16.mxu1 %v2631_v27 }
 0x171   :  { %2271 = vmatpush3.bf16.msra.mxu0 %v2632_v28 }
 0x172   :  { %2293 = vmatpush3.bf16.msra.mxu1 %v2633_v29 }
 0x174   :  { %1911 = vmatmul.mubr.bf16.vlgmr.msra.gmra.mxu0 %v2956_v44 }
 0x175   :  { %1951 = vmatmul.mubr.bf16.vlgmr.msra.gmra.mxu1 %v2944_v37 }
 0x194   :  { %v1666_v33 = vpop.f32.mrf.mxu0  ;;  %v1707_v34 = vpop.f32.mrf.mxu1 }
 0x195   :  { %v1667_v35 = vadd.f32 %v1666_v33, %v448_v31 }
 0x196   :  { %v1668_v36 = vpop.f32.mrf.mxu0  ;;  %v1709_v44 = vpop.f32.mrf.mxu1 }
 0x197   :  { %v1708_v38 = vadd.f32 %v1707_v34, %v1667_v35  ;;  %v1669_v37 = vadd.f32 %v1668_v36, %v452_v32 }
 0x198   :  { %v1670_v39 = vpop.f32.mrf.mxu0  ;;  %v1711_v42 = vpop.f32.mrf.mxu1 }
 0x199   :  { %v1958_v43 = vmul.f32 0.5, %v1708_v38  ;;  %v1710_v45 = vadd.f32 %v1709_v44, %v1669_v37 }
 0x19a   :  { %v1671_v46 = vpop.f32.mrf.mxu0  ;;  %v1712_v47 = vpop.f32.mrf.mxu1 }
 0x19b   :  { %2634 = vtanh.f32 %v1958_v43  ;;  %v1959_v48 = vmul.f32 0.5, %v1710_v45 }
 0x19d   :  { %2636 = vtanh.f32 %v1959_v48 }
 0x1a8   :  { %v2635_v14 = vpop.eup %2634 }
 0x1a9   :  { %v1972_v49 = vmul.f32 0.5, %v2635_v14 }
 0x1aa   :  { %v2637_v50 = vpop.eup %2636 }
 0x1ab   :  { %v1979_v17 = vadd.f32 0.5, %v1972_v49  ;;  %v1973_v51 = vmul.f32 0.5, %v2637_v50  ;;  %v471_v50 = vsub.s32 6, %v2927_v13 }
 0x1ad   :  { %v1986_v52 = vmax.f32 %v1979_v17, 1e-06  ;;  %v1980_v53 = vadd.f32 0.5, %v1973_v51 }
 0x1af   :  { %v1993_v54 = vmin.f32 %v1986_v52, 0.999999  ;;  %v1987_v55 = vmax.f32 %v1980_v53, 1e-06  ;;  %v472_v52 = vrot.slane %v3445_v30, %v471_v50 }
 0x1b1   :  { %2000 = vst [vmem:[#allocation2] sm:$0xff] %v1993_v54  ;;  %v1994_v56 = vmin.f32 %v1987_v55, 0.999999 }
 0x1b3   :  { %2001 = vst [vmem:[#allocation2 + $0x8] sm:$0xff] %v1994_v56 }
 0x1d4   :  { %v1748_v59 = vpop.f32.mrf.mxu0  ;;  %v1789_v60 = vpop.f32.mrf.mxu1 }
 0x1d5   :  { %v1749_v61 = vadd.f32 %v1748_v59, %v456_v57 }
 0x1d6   :  { %v1750_v62 = vpop.f32.mrf.mxu0  ;;  %v1791_v63 = vpop.f32.mrf.mxu1 }
 0x1d7   :  { %v1790_v0 = vadd.f32 %v1789_v60, %v1749_v61  ;;  %v1751_v1 = vadd.f32 %v1750_v62, %v460_v58 }
 0x1d8   :  { %v1752_v2 = vpop.f32.mrf.mxu0  ;;  %v1793_v3 = vpop.f32.mrf.mxu1 }
 0x1d9   :  { %v1960_v4 = vmul.f32 0.5, %v1790_v0  ;;  %v1792_v40 = vadd.f32 %v1791_v63, %v1751_v1 }
 0x1da   :  { %v1753_v5 = vpop.f32.mrf.mxu0  ;;  %v1794_v41 = vpop.f32.mrf.mxu1 }
 0x1db   :  { %2638 = vtanh.f32 %v1960_v4  ;;  %v1961_v6 = vmul.f32 0.5, %v1792_v40 }
 0x1dd   :  { %2640 = vtanh.f32 %v1961_v6 }
 0x1e8   :  { %v2639_v15 = vpop.eup %2638 }
 0x1e9   :  { %v1974_v7 = vmul.f32 0.5, %v2639_v15 }
 0x1ea   :  { %v2641_v8 = vpop.eup %2640 }
 0x1eb   :  { %v1981_v18 = vadd.f32 0.5, %v1974_v7  ;;  %v1975_v9 = vmul.f32 0.5, %v2641_v8 }
 0x1ed   :  { %v1988_v10 = vmax.f32 %v1981_v18, 1e-06  ;;  %v1982_v11 = vadd.f32 0.5, %v1975_v9 }
 0x1ef   :  { %v1995_v12 = vmin.f32 %v1988_v10, 0.999999  ;;  %v1989_v16 = vmax.f32 %v1982_v11, 1e-06 }
 0x1f1   :  { %2002 = vst [vmem:[#allocation2 + $0x10] sm:$0xff] %v1995_v12  ;;  %v1996_v19 = vmin.f32 %v1989_v16, 0.999999 }
 0x1f3   :  { %2003 = vst [vmem:[#allocation2 + $0x18] sm:$0xff] %v1996_v19 }
 0x214   :  { %v1830_v24 = vpop.f32.mrf.mxu0 }
 0x215   :  { %v1831_v25 = vadd.f32 %v1830_v24, %v464_v22  ;;  %v1871_v26 = vpop.f32.mrf.mxu1 }
 0x216   :  { %v1832_v27 = vpop.f32.mrf.mxu0 }
 0x217   :  { %v1872_v28 = vadd.f32 %v1871_v26, %v1831_v25  ;;  %v1833_v29 = vadd.f32 %v1832_v27, %v468_v23  ;;  %v1873_v31 = vpop.f32.mrf.mxu1 }
 0x218   :  { %v1834_v32 = vpop.f32.mrf.mxu0 }
 0x219   :  { %v1962_v33 = vmul.f32 0.5, %v1872_v28  ;;  %v1874_v34 = vadd.f32 %v1873_v31, %v1833_v29  ;;  %v1875_v35 = vpop.f32.mrf.mxu1 }
 0x21a   :  { %v1835_v36 = vpop.f32.mrf.mxu0 }
 0x21b   :  { %2642 = vtanh.f32 %v1962_v33  ;;  %v1963_v44 = vmul.f32 0.5, %v1874_v34  ;;  %v1876_v38 = vpop.f32.mrf.mxu1 }
 0x21d   :  { %2644 = vtanh.f32 %v1963_v44 }
 0x228   :  { %v2643_v37 = vpop.eup %2642 }
 0x229   :  { %v1976_v39 = vmul.f32 0.5, %v2643_v37 }
 0x22a   :  { %v2645_v42 = vpop.eup %2644 }
 0x22b   :  { %v1983_v43 = vadd.f32 0.5, %v1976_v39  ;;  %v1977_v45 = vmul.f32 0.5, %v2645_v42 }
 0x22d   :  { %v1990_v46 = vmax.f32 %v1983_v43, 1e-06  ;;  %v1984_v47 = vadd.f32 0.5, %v1977_v45 }
 0x22f   :  { %v1997_v48 = vmin.f32 %v1990_v46, 0.999999  ;;  %v1991_v14 = vmax.f32 %v1984_v47, 1e-06 }
 0x231   :  { %2004 = vst [vmem:[#allocation2 + $0x20] sm:$0xff] %v1997_v48  ;;  %v1998_v49 = vmin.f32 %v1991_v14, 0.999999 }
 0x233   :  { %2005 = vst [vmem:[#allocation2 + $0x28] sm:$0xff] %v1998_v49 }
 0x234   :  { %v2272_v17 = vpop.f32.mrf.mxu0 }
 0x235   :  { %v2294_v51 = vpop.f32.mrf.mxu1 }
 0x236   :  { %v2273_v53 = vpop.f32.mrf.mxu0 }
 0x237   :  { %v2274_v54 = vadd.f32 %v2273_v53, %v2272_v17  ;;  %v2295_v55 = vpop.f32.mrf.mxu1 }
 0x238   :  { %v2275_v56 = vpop.f32.mrf.mxu0  ;;  %v2296_v58 = vadd.f32 %v2295_v55, %v2294_v51 }
 0x239   :  { %v1913_v57 = vadd.f32 %v2274_v54, %v472_v52  ;;  %v2297_v59 = vpop.f32.mrf.mxu1 }
 0x23a   :  { %v2276_v60 = vpop.f32.mrf.mxu0 }
 0x23b   :  { %v1953_v61 = vadd.f32 %v2296_v58, %v1913_v57  ;;  %v2298_v62 = vpop.f32.mrf.mxu1 }
 0x23d   :  { %v1964_v63 = vmul.f32 0.5, %v1953_v61 }
 0x23f   :  { %2646 = vtanh.f32 %v1964_v63 }
 0x24c   :  { %v2647_v0 = vpop.eup %2646 }
 0x24d   :  { %v1978_v1 = vmul.f32 0.5, %v2647_v0 }
 0x24f   :  { %v1985_v13 = vadd.f32 0.5, %v1978_v1 }
 0x251   :  { %v1992_v2 = vmax.f32 %v1985_v13, 1e-06 }
 0x253   :  { %v1999_v30 = vmin.f32 %v1992_v2, 0.999999 }
 0x255   :  { %2007 = vst.msk [vmem:[#allocation2 + $0x30] sm:$0xff] %vm2006_vm1, %v1999_v30 }
 0x256   :  { %2659 = shalt.err (!%p2656_p4)
}
 0x257   :  { %2017 = dma.vmem_to_hbm [thread:$0]  %s2015_s4, 896, %s3473_s5, [#allocation3]  }
 0x258   :  { %2668 = dma.done.wait [#allocation3], 896  }
 0x259   :  { %2669 = vsyncadd [#allocation3], 4294966400 }
 0x25a   :  { %2021 = vsyncpa [#allocation3], 1 }

</bundles_post_ra>
